<compile_context>
chip_gen: v7x
topology: tpu7x:2x2x1
jax: 0.10.0
libtpu: 0.0.40
codegen_flags: <defaults>
</compile_context>

<pallas_src>
import jax
import jax.numpy as jnp
from jax.experimental import pallas as pl
from jax.experimental.pallas import tpu as pltpu


def se_gate_kernel(w_ref, s_ref, x_ref, o_ref):
    # gate = sigmoid(W_aug @ s_aug)  -> (tile_c, 1); bias is folded into W_aug.
    gate = jnp.dot(w_ref[...], s_ref[...], preferred_element_type=jnp.float32)
    gate = jax.nn.sigmoid(gate)
    # One cast per tile, then broadcast-multiply along the lane (H*W) axis in
    # the activation's native dtype (no per-element upcast of x93).
    o_ref[...] = gate.astype(o_ref.dtype) * x_ref[...]


def prepare_params(weight, bias):
    """One-time parameter prep (do this at load time, not per forward call).

    weight: (C_out, C_in, 1, 1), bias: (C_out,) ->  w_aug: (C_out, C_in + 1) f32
    The extra bias column is free: the lane dim pads 10 -> 128 regardless.
    """
    c_out, c_in = weight.shape[0], weight.shape[1]
    w2d = weight.reshape(c_out, c_in).astype(jnp.float32)
    b_col = bias.reshape(c_out, 1).astype(jnp.float32)
    return jnp.concatenate([w2d, b_col], axis=1)


def _pick_tile(c_out, dtype):
    """Chip-aware channel tile.  v6e/v7x: prefer 120 (grid=2, balanced across
    v7x's two TCs).  v5e: prefer 80 (grid=3, overlaps DMA at the HBM roofline).
    2-byte dtypes need a multiple-of-16 tile (bf16 sublane packing)."""
    mult = 16 if jnp.dtype(dtype).itemsize == 2 else 8
    try:
        kind = jax.devices()[0].device_kind.lower()
    except Exception:  # pragma: no cover - CPU interpret / unknown backend
        kind = ""
    is_v5 = "v5" in kind
    prefs = (80, 48, 40, 32, 16, 8) if is_v5 else (120, 80, 48, 40, 32, 16, 8)
    for cand in prefs:
        if c_out % cand == 0 and cand % mult == 0:
            return cand
    return c_out  # fall back to a single full-extent block


def se_gate(x96, x93, w_aug):
    """x96: (1, C_in, 1, 1), x93: (1, C_out, H, W), w_aug: (C_out, C_in + 1)."""
    _, c_in, _, _ = x96.shape
    _, c_out, h, w = x93.shape
    hw = h * w

    # s_aug = [x96 ; 1]: single pad op (constant row of 1.0 multiplies the
    # folded bias column), instead of reshape+astype+concatenate per call.
    s_aug = jnp.pad(
        x96.reshape(c_in, 1).astype(jnp.float32),
        ((0, 1), (0, 0)),
        constant_values=1.0,
    )  # (C_in + 1, 1)

    x = x93.reshape(c_out, hw)

    tile_c = _pick_tile(c_out, x93.dtype)
    grid = (c_out // tile_c,)

    itemsize = jnp.dtype(x93.dtype).itemsize
    cost = pl.CostEstimate(
        flops=2 * c_out * (c_in + 1) + c_out * hw,
        transcendentals=c_out,
        bytes_accessed=2 * c_out * hw * itemsize
        + c_out * (c_in + 1) * 4
        + (c_in + 1) * 4,
    )

    out = pl.pallas_call(
        se_gate_kernel,
        out_shape=jax.ShapeDtypeStruct((c_out, hw), x93.dtype),
        grid=grid,
        in_specs=[
            pl.BlockSpec((tile_c, c_in + 1), lambda i: (i, 0)),   # W_aug rows
            pl.BlockSpec((c_in + 1, 1), lambda i: (0, 0)),        # s_aug (untiled)
            pl.BlockSpec((tile_c, hw), lambda i: (i, 0)),         # x93 rows
        ],
        out_specs=pl.BlockSpec((tile_c, hw), lambda i: (i, 0)),
        compiler_params=pltpu.CompilerParams(
            dimension_semantics=("parallel",),
        ),
        cost_estimate=cost,
    )(w_aug, s_aug, x)

    return out.reshape(1, c_out, h, w)


if __name__ == "__main__":
    key = jax.random.PRNGKey(0)
    k1, k2, k3, k4 = jax.random.split(key, 4)

    C_IN, C_OUT, H, W = 10, 240, 28, 28

    # Deterministic parameter init (same shapes as Conv2d(10, 240, kernel_size=1))
    fan_in = C_IN  # 1x1 kernel
    bound = 1.0 / jnp.sqrt(fan_in)
    weight = jax.random.uniform(k1, (C_OUT, C_IN, 1, 1), jnp.float32, -bound, bound)
    bias = jax.random.uniform(k2, (C_OUT,), jnp.float32, -bound, bound)

    # Inputs matching the module's forward signature
    x96 = jax.random.normal(k3, (1, C_IN, 1, 1), jnp.float32)
    x93 = jax.random.normal(k4, (1, C_OUT, H, W), jnp.float32)

    # One-time parameter prep (hoisted out of the per-call path).
    w_aug = jax.block_until_ready(prepare_params(weight, bias))

    fwd = jax.jit(se_gate)
    out = fwd(x96, x93, w_aug)
    out = jax.block_until_ready(out)

    # Pure-JAX reference check
    gate_ref = jax.nn.sigmoid(
        jnp.einsum("oi,i->o", weight.reshape(C_OUT, C_IN), x96.reshape(C_IN)) + bias
    ).reshape(1, C_OUT, 1, 1)
    ref = gate_ref * x93
    assert out.shape == (1, C_OUT, H, W)
    assert jnp.allclose(out, ref, atol=1e-5, rtol=1e-5)

    print("KERNEL_OK")
</pallas_src>

<mosaic_0001>
module attributes {stable_mosaic.version = 11 : i64} {
  func.func @se_gate_kernel(%arg0: i32, %arg1: memref<120x11xf32, #tpu.memory_space<vmem>>, %arg2: memref<11x1xf32, #tpu.memory_space<vmem>>, %arg3: memref<120x784xf32, #tpu.memory_space<vmem>>, %arg4: memref<120x784xf32, #tpu.memory_space<vmem>>) attributes {dimension_semantics = [#tpu.dimension_semantics<parallel>], iteration_bounds = array<i64: 2>, scalar_prefetch = 0 : i64, scratch_operands = 0 : i64, tpu.core_type = #tpu.core_type<tc>, window_params = [{transform_indices = @transform_0, window_bounds = array<i64: 120, 11>}, {pipeline_mode = #tpu.pipeline_mode<synchronous>, transform_indices = @transform_1, window_bounds = array<i64: 11, 1>}, {transform_indices = @transform_2, window_bounds = array<i64: 120, 784>}, {transform_indices = @transform_3, window_bounds = array<i64: 120, 784>}]} {
    %c0 = arith.constant 0 : index
    %c0_0 = arith.constant 0 : index
    %0 = vector.load %arg1[%c0, %c0_0] : memref<120x11xf32, #tpu.memory_space<vmem>>, vector<120x11xf32>
    %c0_1 = arith.constant 0 : index
    %c0_2 = arith.constant 0 : index
    %1 = vector.load %arg2[%c0_1, %c0_2] : memref<11x1xf32, #tpu.memory_space<vmem>>, vector<11x1xf32>
    %cst = arith.constant dense<0.000000e+00> : vector<120x1xf32>
    %2 = tpu.matmul %0, %1, %cst {dimension_numbers = #tpu.dot_dimension_numbers<[1], [0], [0], [1], [0, 0, 1, 1], [], []>} : vector<120x11xf32>, vector<11x1xf32>, vector<120x1xf32> -> vector<120x1xf32>
    %3 = arith.negf %2 : vector<120x1xf32>
    %4 = math.exp %3 : vector<120x1xf32>
    %cst_3 = arith.constant 1.000000e+00 : f32
    %5 = vector.broadcast %cst_3 : f32 to vector<120x1xf32>
    %6 = arith.addf %5, %4 : vector<120x1xf32>
    %7 = arith.divf %5, %6 : vector<120x1xf32>
    %c0_4 = arith.constant 0 : index
    %c0_5 = arith.constant 0 : index
    %8 = vector.load %arg3[%c0_4, %c0_5] : memref<120x784xf32, #tpu.memory_space<vmem>>, vector<120x784xf32>
    %9 = vector.broadcast %7 : vector<120x1xf32> to vector<120x784xf32>
    %10 = arith.mulf %9, %8 : vector<120x784xf32>
    %c0_6 = arith.constant 0 : index
    %c0_7 = arith.constant 0 : index
    %11 = vector.load %arg4[%c0_6, %c0_7] : memref<120x784xf32, #tpu.memory_space<vmem>>, vector<120x784xf32>
    tpu.vector_store %arg4[%c0_6, %c0_7], %10 {strides = array<i32>} : memref<120x784xf32, #tpu.memory_space<vmem>>, vector<120x784xf32>,
    return
  }
  func.func @transform_0(%arg0: i32) -> (i32, i32) {
    %c0_i32 = arith.constant 0 : i32
    %c0_i32_0 = arith.constant 0 : i32
    return %arg0, %c0_i32 : i32, i32
  }
  func.func @transform_1(%arg0: i32) -> (i32, i32) {
    %c0_i32 = arith.constant 0 : i32
    %c0_i32_0 = arith.constant 0 : i32
    %c0_i32_1 = arith.constant 0 : i32
    return %c0_i32, %c0_i32_0 : i32, i32
  }
  func.func @transform_2(%arg0: i32) -> (i32, i32) {
    %c0_i32 = arith.constant 0 : i32
    %c0_i32_0 = arith.constant 0 : i32
    return %arg0, %c0_i32 : i32, i32
  }
  func.func @transform_3(%arg0: i32) -> (i32, i32) {
    %c0_i32 = arith.constant 0 : i32
    %c0_i32_0 = arith.constant 0 : i32
    return %arg0, %c0_i32 : i32, i32
  }
}

</mosaic_0001>

<bundles_post_ra>
// kernel: se_gate.1
= control target key start
LH: loop header
LB: loop body
LE: loop exit
PB: predicated region body
PF: predicated region fallthrough
CT: control target
= control target key end

     0   :  { %s1181_s12 = smov 0   ;;  %s1487_s0 = inlined_call_operand.vmem [shape: f32[240,11], index: 0, kind: input, shape index: {}]   ;;  %s1488_s1 = inlined_call_operand.vmem [shape: f32[11,1], index: 1, kind: input, shape index: {}]   ;;  %s1489_s2 = inlined_call_operand.vmem [shape: f32[240,784], index: 2, kind: input, shape index: {}]   ;;  %s1490_s3 = inlined_call_operand.vmem [shape: f32[240,784], index: 3, kind: output, shape index: {}]  }
   0x1 LB: > { %s959_s13 = sadd.s32 4294967295, %s1154_s12   ;;  %p963_p0 = scmp.ge.s32.totalorder %s1154_s12, 1  ;;  %s1154_s12 = sphi %s1181_s12, %s13_s12  }
   0x2   : > { %p150_p1 = scmp.lt.s32.totalorder %s1154_s12, 3 }
   0x4   : > { %p151_p2 = pnand %p963_p0, %p150_p1 }
   0x5   : > { %v216_v0 = vld [vmem:[%s1488_s1] sm:$0xff] (!%p151_p2)  ;;  %v217_v1 = vld [vmem:[%s1488_s1 + $0x8] sm:$0x7] (!%p151_p2)  ;;  %vm264_vm0 = vcmask (!%p151_p2), 1042432   ;;  %v1156_v2 = vmov (!%p151_p2), 0.0|0.0   ;;  %vm1157_vm1 = vmmov (!%p151_p2), 1  }
   0x6   : > { %154 = sbr.rel (%p151_p2) target bundleno = 440 (0x1b8), region = 32  ;;  %1066 = vmatprep.subr.bf16.mxu0 (!%p151_p2), %v1156_v2  ;;  %1070 = vmatprep.subr.bf16.mxu1 (!%p151_p2), %v1156_v2  ;;  %v1067_v3 = vpack.c.bf16 (!%p151_p2), %v217_v1, %v216_v0  ;;  %vm1068_vm2 = vmpackc.low (!%p151_p2), %vm264_vm0, %vm1157_vm1  ;;  %vm1158_vm3 = vmmov (!%p151_p2), 0   ;;  %v1159_v4 = vmov (!%p151_p2), 0.0   ;;  %vm218_vm4 = vcmask (!%p151_p2), 89088  }
   0x7   : > { %s181_s18 = smul.u32 (!%p151_p2), 15, %s959_s13  ;;  %1021 = vmatprep.mubr.msk.f32.mxu0 (!%p151_p2), %vm1158_vm3, %v1159_v4  ;;  %1045 = vmatprep.mubr.msk.f32.mxu1 (!%p151_p2), %vm1158_vm3, %v1159_v4  ;;  %v1160_v20 = vmov (!%p151_p2), 0   ;;  %vm789_vm5 = vcmask (!%p151_p2), 130048  }
   0x8   : > { %1069 = vmatpush3.bf16.msk.msra.mxu0 (!%p151_p2), %vm1068_vm2, %v1067_v3  ;;  %1071 = vmatpush3.bf16.msk.msra.mxu1 (!%p151_p2), %vm1068_vm2, %v1067_v3 }
   0x9   : > { %p182_p3 = scmp.lt.s32.totalorder (!%p151_p2), %s181_s18, 29  ;;  %1086 = vset.pattern.permute.xlu0 (!%p151_p2), %v1160_v20  ;;  %1087 = vset.pattern.permute.xlu1 (!%p151_p2), %v1160_v20 }
   0xd   : > { %s1492_s18 = smov (!%p182_p3, %s181_s18), 29 }
   0xe   : > { %s964_s19 = sshll.u32 %s1492_s18, 3  ;;  %s1072_s23 = smul.u32 56, %s1492_s18 }
   0xf   : > { %s1203_s22 = scalar_lea.vmem %s1487_s0, %s964_s19 }
  0x10   : > { %v201_v5 = vld [vmem:[%s1203_s22] sm:$0xff]  ;;  %v202_v7 = vld [vmem:[%s1203_s22 + $0x8] sm:$0xff]  ;;  %v203_v9 = vld [vmem:[%s1203_s22 + $0x10] sm:$0xff]  ;;  %s1252_s26 = scalar_lea.vmem %s1489_s2, %s1072_s23  ;;  %s1264_s29 = scalar_lea.vmem %s1490_s3, %s1072_s23 }
  0x11   : > { %v209_v6 = vld [vmem:[%s1203_s22 + $0x40] sm:$0xff]  ;;  %1022 = vmatmul.mubr.msk.f32.vlgmr.msra.gmra.mrb[0].mxu0 %vm218_vm4, %v201_v5  ;;  %v210_v8 = vld [vmem:[%s1203_s22 + $0x48] sm:$0xff]  ;;  %v211_v10 = vld [vmem:[%s1203_s22 + $0x50] sm:$0xff] }
  0x12   : > { %1046 = vmatmul.mubr.msk.f32.vlgmr.msra.gmra.mrb[0].mxu1 %vm218_vm4, %v209_v6  ;;  %1024 = vmatprep.mubr.msk.f32.mxu0 %vm1158_vm3, %v1159_v4  ;;  %v204_v11 = vld [vmem:[%s1203_s22 + $0x18] sm:$0xff]  ;;  %v205_v13 = vld [vmem:[%s1203_s22 + $0x20] sm:$0xff]  ;;  %v206_v15 = vld [vmem:[%s1203_s22 + $0x28] sm:$0xff] }
  0x13   : > { %1048 = vmatprep.mubr.msk.f32.mxu1 %vm1158_vm3, %v1159_v4  ;;  %v212_v12 = vld [vmem:[%s1203_s22 + $0x58] sm:$0xff]  ;;  %v213_v14 = vld [vmem:[%s1203_s22 + $0x60] sm:$0xff]  ;;  %v214_v16 = vld [vmem:[%s1203_s22 + $0x68] sm:$0xff] }
  0x14   : > { %v207_v17 = vld [vmem:[%s1203_s22 + $0x30] sm:$0xff]  ;;  %v208_v19 = vld [vmem:[%s1203_s22 + $0x38] sm:$0xff] }
  0x15   : > { %1025 = vmatmul.mubr.msk.f32.gmra.mrb[2].mxu0 %vm218_vm4, %v202_v7  ;;  %v215_v18 = vld [vmem:[%s1203_s22 + $0x70] sm:$0xff] }
  0x16   : > { %1049 = vmatmul.mubr.msk.f32.gmra.mrb[2].mxu1 %vm218_vm4, %v210_v8  ;;  %1027 = vmatprep.mubr.msk.f32.mxu0 %vm1158_vm3, %v1159_v4 }
  0x17   : > { %1051 = vmatprep.mubr.msk.f32.mxu1 %vm1158_vm3, %v1159_v4 }
  0x19   : > { %1028 = vmatmul.mubr.msk.f32.gmra.mrb[4].mxu0 %vm218_vm4, %v203_v9 }
  0x1a   : > { %1052 = vmatmul.mubr.msk.f32.gmra.mrb[4].mxu1 %vm218_vm4, %v211_v10  ;;  %1030 = vmatprep.mubr.msk.f32.mxu0 %vm1158_vm3, %v1159_v4 }
  0x1b   : > { %1054 = vmatprep.mubr.msk.f32.mxu1 %vm1158_vm3, %v1159_v4 }
  0x1d   : > { %1031 = vmatmul.mubr.msk.f32.gmra.mrb[6].mxu0 %vm218_vm4, %v204_v11 }
  0x1e   : > { %1055 = vmatmul.mubr.msk.f32.gmra.mrb[6].mxu1 %vm218_vm4, %v212_v12  ;;  %1033 = vmatprep.mubr.msk.f32.mxu0 %vm1158_vm3, %v1159_v4 }
  0x1f   : > { %1057 = vmatprep.mubr.msk.f32.mxu1 %vm1158_vm3, %v1159_v4 }
  0x21   : > { %1034 = vmatmul.mubr.msk.f32.gmra.mrb[8].mxu0 %vm218_vm4, %v205_v13 }
  0x22   : > { %1058 = vmatmul.mubr.msk.f32.gmra.mrb[8].mxu1 %vm218_vm4, %v213_v14  ;;  %1036 = vmatprep.mubr.msk.f32.mxu0 %vm1158_vm3, %v1159_v4 }
  0x23   : > { %1060 = vmatprep.mubr.msk.f32.mxu1 %vm1158_vm3, %v1159_v4 }
  0x25   : > { %1037 = vmatmul.mubr.msk.f32.gmra.mrb[10].mxu0 %vm218_vm4, %v206_v15 }
  0x26   : > { %1061 = vmatmul.mubr.msk.f32.gmra.mrb[10].mxu1 %vm218_vm4, %v214_v16  ;;  %1039 = vmatprep.mubr.msk.f32.mxu0 %vm1158_vm3, %v1159_v4 }
  0x27   : > { %1063 = vmatprep.mubr.msk.f32.mxu1 %vm1158_vm3, %v1159_v4 }
  0x29   : > { %1040 = vmatmul.mubr.msk.f32.gmra.mrb[12].mxu0 %vm218_vm4, %v207_v17 }
  0x2a   : > { %1064 = vmatmul.mubr.msk.f32.gmra.mrb[12].mxu1 %vm218_vm4, %v215_v18  ;;  %1042 = vmatprep.mubr.msk.f32.mxu0 %vm1158_vm3, %v1159_v4 }
  0x2d   : > { %1043 = vmatmul.mubr.msk.f32.gmra.mrb[14].mxu0 %vm218_vm4, %v208_v19 }
  0xe4   : > { %v334_v21 = vpop.f32.mrb[0].mxu0 }
  0xe5   : > { %v374_v22 = vpop.f32.mrb[0].mxu1  ;;  %v983_v23 = vmul.f32 -1.442695, %v334_v21  ;;  %v1023_v24 = vpop.f32.mrb[1].mxu0 }
  0xe6   : > { %v991_v25 = vmul.f32 -1.442695, %v374_v22  ;;  %v1047_v26 = vpop.f32.mrb[1].mxu1 }
  0xe7   : > { %1088 = vpow2.f32 %v983_v23 }
  0xe8   : > { %1090 = vpow2.f32 %v991_v25  ;;  %v339_v27 = vpop.f32.mrb[2].mxu0 }
  0xe9   : > { %v379_v28 = vpop.f32.mrb[2].mxu1  ;;  %v984_v29 = vmul.f32 -1.442695, %v339_v27  ;;  %v1026_v31 = vpop.f32.mrb[3].mxu0 }
  0xea   : > { %v992_v30 = vmul.f32 -1.442695, %v379_v28  ;;  %v1050_v32 = vpop.f32.mrb[3].mxu1 }
  0xeb   : > { %1092 = vpow2.f32 %v984_v29 }
  0xec   : > { %1094 = vpow2.f32 %v992_v30  ;;  %v344_v33 = vpop.f32.mrb[4].mxu0 }
  0xed   : > { %v384_v34 = vpop.f32.mrb[4].mxu1  ;;  %v985_v35 = vmul.f32 -1.442695, %v344_v33  ;;  %v1029_v36 = vpop.f32.mrb[5].mxu0 }
  0xee   : > { %v993_v37 = vmul.f32 -1.442695, %v384_v34  ;;  %v1053_v38 = vpop.f32.mrb[5].mxu1 }
  0xef   : > { %1096 = vpow2.f32 %v985_v35 }
  0xf0   : > { %v349_v39 = vpop.f32.mrb[6].mxu0  ;;  %1098 = vpow2.f32 %v993_v37 }
  0xf1   : > { %v389_v40 = vpop.f32.mrb[6].mxu1  ;;  %v1089_v41 = vpop.eup %1088  ;;  %v986_v42 = vmul.f32 -1.442695, %v349_v39 }
  0xf2   : > { %v1032_v43 = vpop.f32.mrb[7].mxu0  ;;  %v1056_v44 = vpop.f32.mrb[7].mxu1  ;;  %v453_v46 = vadd.f32 1.0, %v1089_v41  ;;  %v994_v47 = vmul.f32 -1.442695, %v389_v40 }
  0xf3   : > { %v1091_v45 = vpop.eup %1090  ;;  %1100 = vpow2.f32 %v986_v42 }
  0xf4   : > { %v461_v48 = vadd.f32 1.0, %v1091_v45  ;;  %1102 = vrcp.f32 %v453_v46  ;;  %v354_v49 = vpop.f32.mrb[8].mxu0 }
  0xf5   : > { %v394_v50 = vpop.f32.mrb[8].mxu1  ;;  %v1093_v51 = vpop.eup %1092  ;;  %v987_v52 = vmul.f32 -1.442695, %v354_v49  ;;  %v500_v49 = vld [vmem:[%s1252_s26 + $0x10] sm:$0xff] }
  0xf6   : > { %1104 = vrcp.f32 %v461_v48  ;;  %v1035_v53 = vpop.f32.mrb[9].mxu0  ;;  %v1059_v54 = vpop.f32.mrb[9].mxu1  ;;  %v454_v56 = vadd.f32 1.0, %v1093_v51  ;;  %v995_v57 = vmul.f32 -1.442695, %v394_v50  ;;  %v499_v48 = vld [vmem:[%s1252_s26 + $0x8] sm:$0xff] }
  0xf7   : > { %v1095_v55 = vpop.eup %1094  ;;  %1106 = vpow2.f32 %v994_v47  ;;  %v498_v47 = vld [vmem:[%s1252_s26] sm:$0xff]  ;;  %v501_v50 = vld [vmem:[%s1252_s26 + $0x18] sm:$0xff]  ;;  %v504_v53 = vld [vmem:[%s1252_s26 + $0x30] sm:$0xff] }
  0xf8   : > { %v462_v58 = vadd.f32 1.0, %v1095_v55  ;;  %1108 = vpow2.f32 %v987_v52  ;;  %v359_v59 = vpop.f32.mrb[10].mxu0  ;;  %v502_v51 = vld [vmem:[%s1252_s26 + $0x20] sm:$0xff]  ;;  %v503_v52 = vld [vmem:[%s1252_s26 + $0x28] sm:$0xff] }
  0xf9   : > { %1110 = vrcp.f32 %v454_v56  ;;  %v399_v60 = vpop.f32.mrb[10].mxu1  ;;  %v1097_v61 = vpop.eup %1096  ;;  %v988_v62 = vmul.f32 -1.442695, %v359_v59  ;;  %v561_v59 = vld [vmem:[%s1252_s26 + $0x1f8] sm:$0xff] }
  0xfa   : > { %1112 = vrcp.f32 %v462_v58  ;;  %v1038_v63 = vpop.f32.mrb[11].mxu0  ;;  %v1062_v0 = vpop.f32.mrb[11].mxu1  ;;  %v455_v2 = vadd.f32 1.0, %v1097_v61  ;;  %v996_v13 = vmul.f32 -1.442695, %v399_v60  ;;  %v562_v60 = vld [vmem:[%s1252_s26 + $0x200] sm:$0xff] }
  0xfb   : > { %v1099_v1 = vpop.eup %1098  ;;  %1114 = vpow2.f32 %v995_v57  ;;  %v563_v61 = vld [vmem:[%s1252_s26 + $0x208] sm:$0xff]  ;;  %v554_v63 = vld [vmem:[%s1252_s26 + $0x1c0] sm:$0xff] }
  0xfc   : > { %v463_v3 = vadd.f32 1.0, %v1099_v1  ;;  %1116 = vpow2.f32 %v988_v62  ;;  %v364_v4 = vpop.f32.mrb[12].mxu0  ;;  %v564_v62 = vld [vmem:[%s1252_s26 + $0x210] sm:$0xff] }
  0xfd   : > { %1118 = vrcp.f32 %v455_v2  ;;  %v404_v5 = vpop.f32.mrb[12].mxu1  ;;  %v1101_v6 = vpop.eup %1100  ;;  %v989_v7 = vmul.f32 -1.442695, %v364_v4  ;;  %v566_v4 = vld [vmem:[%s1252_s26 + $0x220] sm:$0xff] }
  0xfe   : > { %v1041_v8 = vpop.f32.mrb[13].mxu0  ;;  %v997_v9 = vmul.f32 -1.442695, %v404_v5  ;;  %v1065_v10 = vpop.f32.mrb[13].mxu1  ;;  %v456_v12 = vadd.f32 1.0, %v1101_v6  ;;  %1120 = vrcp.f32 %v463_v3  ;;  %v565_v3 = vld [vmem:[%s1252_s26 + $0x218] sm:$0xff] }
  0xff   : > { %v1103_v11 = vpop.eup %1102  ;;  %1122 = vpow2.f32 %v989_v7  ;;  %v567_v5 = vld [vmem:[%s1252_s26 + $0x228] sm:$0xff]  ;;  %v556_v7 = vld [vmem:[%s1252_s26 + $0x1d0] sm:$0xff]  ;;  %v557_v8 = vld [vmem:[%s1252_s26 + $0x1d8] sm:$0xff] }
 0x100   : > { %v1105_v14 = vpop.eup %1104  ;;  %605 = vperm.xlu0 %1086, %v1103_v11   ;;  %1124 = vrcp.f32 %v456_v12  ;;  %v369_v16 = vpop.f32.mrb[14].mxu0  ;;  %v555_v6 = vld [vmem:[%s1252_s26 + $0x1c8] sm:$0xff]  ;;  %v560_v11 = vld [vmem:[%s1252_s26 + $0x1f0] sm:$0xff] }
 0x101   : > { %v1107_v15 = vpop.eup %1106  ;;  %v990_v19 = vmul.f32 -1.442695, %v369_v16  ;;  %1126 = vpow2.f32 %v997_v9  ;;  %v1044_v20 = vpop.f32.mrb[15].mxu0  ;;  %v558_v9 = vld [vmem:[%s1252_s26 + $0x1e0] sm:$0xff]  ;;  %v559_v10 = vld [vmem:[%s1252_s26 + $0x1e8] sm:$0xff]  ;;  %v508_v16 = vld [vmem:[%s1252_s26 + $0x50] sm:$0xff] }
 0x102   : > { %v1109_v17 = vpop.eup %1108  ;;  %v464_v18 = vadd.f32 1.0, %v1107_v15  ;;  %1128 = vpow2.f32 %v996_v13  ;;  %v505_v13 = vld [vmem:[%s1252_s26 + $0x38] sm:$0xff]  ;;  %v507_v15 = vld [vmem:[%s1252_s26 + $0x48] sm:$0xff] }
 0x103   : > { %v1111_v21 = vpop.eup %1110  ;;  %v457_v22 = vadd.f32 1.0, %v1109_v17 }
 0x104   : > { %v1113_v23 = vpop.eup %1112  ;;  %1130 = vrcp.f32 %v464_v18  ;;  %645 = vperm.xlu0 %1086, %v1105_v14   ;;  %v506_v14 = vld [vmem:[%s1252_s26 + $0x40] sm:$0xff] }
 0x105   : > { %v1115_v24 = vpop.eup %1114  ;;  %1132 = vrcp.f32 %v457_v22  ;;  %650 = vperm.xlu1 %1087, %v1113_v23   ;;  %v509_v22 = vld [vmem:[%s1252_s26 + $0x58] sm:$0xff]  ;;  %v510_v23 = vld [vmem:[%s1252_s26 + $0x60] sm:$0xff] }
 0x106   : > { %v1117_v25 = vpop.eup %1116  ;;  %v465_v26 = vadd.f32 1.0, %v1115_v24  ;;  %1134 = vpow2.f32 %v990_v19  ;;  %v511_v24 = vld [vmem:[%s1252_s26 + $0x68] sm:$0xff] }
 0x107   : > { %v1119_v27 = vpop.eup %1118  ;;  %v458_v28 = vadd.f32 1.0, %v1117_v25 }
 0x108   : > { %1136 = vrcp.f32 %v465_v26  ;;  %610 = vperm.xlu0 %1086, %v1111_v21   ;;  %v1121_v29 = vpop.eup %1120 }
 0x109   : > { %1138 = vrcp.f32 %v458_v28  ;;  %615 = vperm.xlu1 %1087, %v1119_v27   ;;  %v1123_v30 = vpop.eup %1122 }
 0x10a   : > { %v1125_v31 = vpop.eup %1124  ;;  %v459_v32 = vadd.f32 1.0, %v1123_v30  ;;  %v513_v30 = vld [vmem:[%s1252_s26 + $0x78] sm:$0xff] }
 0x10b   : > { %v1127_v33 = vpop.eup %1126 }
 0x10c   : > { %655 = vperm.xlu0 %1086, %v1121_v29   ;;  %v1129_v34 = vpop.eup %1128  ;;  %1140 = vrcp.f32 %v459_v32  ;;  %v467_v35 = vadd.f32 1.0, %v1127_v33  ;;  %v512_v29 = vld [vmem:[%s1252_s26 + $0x70] sm:$0xff] }
 0x10d   : > { %620 = vperm.xlu1 %1087, %v1125_v31   ;;  %v466_v42 = vadd.f32 1.0, %v1129_v34  ;;  %v514_v31 = vld [vmem:[%s1252_s26 + $0x80] sm:$0xff] }
 0x10e   : > { %v1131_v36 = vpop.eup %1130  ;;  %1142 = vrcp.f32 %v467_v35 }
 0x10f   : > { %v1133_v37 = vpop.eup %1132 }
 0x110   : > { %v1135_v38 = vpop.eup %1134  ;;  %625 = vperm.xlu0 %1086, %v1133_v37   ;;  %v516_v37 = vld [vmem:[%s1252_s26 + $0x90] sm:$0xff] }
 0x111   : > { %v460_v39 = vadd.f32 1.0, %v1135_v38  ;;  %660 = vperm.xlu1 %1087, %v1131_v36   ;;  %v515_v36 = vld [vmem:[%s1252_s26 + $0x88] sm:$0xff]  ;;  %v517_v38 = vld [vmem:[%s1252_s26 + $0x98] sm:$0xff] }
 0x112   : > { %v1137_v40 = vpop.eup %1136 }
 0x113   : > { %v1139_v41 = vpop.eup %1138  ;;  %1144 = vrcp.f32 %v460_v39 }
 0x114   : > { %665 = vperm.xlu0 %1086, %v1137_v40   ;;  %1146 = vrcp.f32 %v466_v42  ;;  %v518_v42 = vld [vmem:[%s1252_s26 + $0xa0] sm:$0xff] }
 0x115   : > { %630 = vperm.xlu1 %1087, %v1139_v41  }
 0x116   : > { %v1141_v43 = vpop.eup %1140 }
 0x118   : > { %635 = vperm.xlu0 %1086, %v1141_v43   ;;  %v1143_v44 = vpop.eup %1142  ;;  %v568_v43 = vld [vmem:[%s1252_s26 + $0x230] sm:$0xff] }
 0x11c   : > { %675 = vperm.xlu0 %1086, %v1143_v44   ;;  %v569_v44 = vld [vmem:[%s1252_s26 + $0x238] sm:$0xff] }
 0x11d   : > { %v1145_v45 = vpop.eup %1144 }
 0x11e   : > { %640 = vperm.xlu1 %1087, %v1145_v45   ;;  %v1147_v46 = vpop.eup %1146 }
 0x122   : > { %670 = vperm.xlu1 %1087, %v1147_v46  }
 0x17f   : > { %v606_v54 = vpop.permute.xlu0 %605 }
 0x180   : > { %v678_v55 = vmul.f32 %v606_v54, %v498_v47  ;;  %v679_v56 = vmul.f32 %v606_v54, %v499_v48  ;;  %v680_v57 = vmul.f32 %v606_v54, %v500_v49  ;;  %v681_v58 = vmul.f32 %v606_v54, %v501_v50  ;;  %v570_v50 = vld [vmem:[%s1252_s26 + $0x240] sm:$0xff] }
 0x181   : > { %v682_v0 = vmul.f32 %v606_v54, %v502_v51  ;;  %v683_v1 = vmul.f32 %v606_v54, %v503_v52  ;;  %v684_v2 = vmul.f32 %v606_v54, %v504_v53  ;;  %v571_v51 = vld [vmem:[%s1252_s26 + $0x248] sm:$0xff]  ;;  %v572_v52 = vld [vmem:[%s1252_s26 + $0x250] sm:$0xff] }
 0x182   : > { %783 = vst [vmem:[%s1264_s29] sm:$0xff] %v678_v55  ;;  %784 = vst [vmem:[%s1264_s29 + $0x8] sm:$0xff] %v679_v56 }
 0x183   : > { %785 = vst [vmem:[%s1264_s29 + $0x10] sm:$0xff] %v680_v57  ;;  %786 = vst [vmem:[%s1264_s29 + $0x18] sm:$0xff] %v681_v58  ;;  %v646_v12 = vpop.permute.xlu0 %645  ;;  %v573_v57 = vld [vmem:[%s1252_s26 + $0x258] sm:$0xff]  ;;  %v574_v58 = vld [vmem:[%s1252_s26 + $0x260] sm:$0xff] }
 0x184   : > { %787 = vst [vmem:[%s1264_s29 + $0x20] sm:$0xff] %v682_v0  ;;  %788 = vst [vmem:[%s1264_s29 + $0x28] sm:$0xff] %v683_v1  ;;  %v651_v17 = vpop.permute.xlu1 %650  ;;  %v734_v18 = vmul.f32 %v646_v12, %v554_v63  ;;  %v735_v19 = vmul.f32 %v646_v12, %v555_v6  ;;  %v736_v20 = vmul.f32 %v646_v12, %v556_v7  ;;  %v520_v0 = vld [vmem:[%s1252_s26 + $0xb0] sm:$0xff]  ;;  %v521_v1 = vld [vmem:[%s1252_s26 + $0xb8] sm:$0xff] }
 0x185   : > { %790 = vst.msk [vmem:[%s1264_s29 + $0x30] sm:$0xff] %vm789_vm5, %v684_v2  ;;  %v737_v21 = vmul.f32 %v646_v12, %v557_v8  ;;  %v741_v25 = vmul.f32 %v651_v17, %v561_v59  ;;  %v742_v26 = vmul.f32 %v651_v17, %v562_v60  ;;  %v743_v27 = vmul.f32 %v651_v17, %v563_v61  ;;  %v519_v59 = vld [vmem:[%s1252_s26 + $0xa8] sm:$0xff]  ;;  %v522_v2 = vld [vmem:[%s1252_s26 + $0xc0] sm:$0xff]  ;;  %v524_v7 = vld [vmem:[%s1252_s26 + $0xd0] sm:$0xff] }
 0x186   : > { %v744_v28 = vmul.f32 %v651_v17, %v564_v62  ;;  %v745_v32 = vmul.f32 %v651_v17, %v565_v3  ;;  %v746_v33 = vmul.f32 %v651_v17, %v566_v4  ;;  %v747_v34 = vmul.f32 %v651_v17, %v567_v5  ;;  %840 = vst [vmem:[%s1264_s29 + $0x1c0] sm:$0xff] %v734_v18  ;;  %v523_v6 = vld [vmem:[%s1252_s26 + $0xc8] sm:$0xff]  ;;  %v525_v8 = vld [vmem:[%s1252_s26 + $0xd8] sm:$0xff]  ;;  %v578_v17 = vld [vmem:[%s1252_s26 + $0x280] sm:$0xff] }
 0x187   : > { %v738_v35 = vmul.f32 %v646_v12, %v558_v9  ;;  %841 = vst [vmem:[%s1264_s29 + $0x1c8] sm:$0xff] %v735_v19  ;;  %842 = vst [vmem:[%s1264_s29 + $0x1d0] sm:$0xff] %v736_v20  ;;  %v739_v39 = vmul.f32 %v646_v12, %v559_v10  ;;  %v740_v40 = vmul.f32 %v646_v12, %v560_v11  ;;  %v611_v41 = vpop.permute.xlu0 %610  ;;  %v526_v18 = vld [vmem:[%s1252_s26 + $0xe0] sm:$0xff] }
 0x188   : > { %843 = vst [vmem:[%s1264_s29 + $0x1d8] sm:$0xff] %v737_v21  ;;  %847 = vst [vmem:[%s1264_s29 + $0x1f8] sm:$0xff] %v741_v25  ;;  %v685_v45 = vmul.f32 %v611_v41, %v505_v13  ;;  %v686_v46 = vmul.f32 %v611_v41, %v506_v14  ;;  %v687_v47 = vmul.f32 %v611_v41, %v507_v15  ;;  %v616_v49 = vpop.permute.xlu1 %615  ;;  %v575_v14 = vld [vmem:[%s1252_s26 + $0x268] sm:$0xff]  ;;  %v576_v15 = vld [vmem:[%s1252_s26 + $0x270] sm:$0xff] }
 0x189   : > { %848 = vst [vmem:[%s1264_s29 + $0x200] sm:$0xff] %v742_v26  ;;  %849 = vst [vmem:[%s1264_s29 + $0x208] sm:$0xff] %v743_v27  ;;  %v688_v48 = vmul.f32 %v611_v41, %v508_v16  ;;  %v689_v53 = vmul.f32 %v611_v41, %v509_v22  ;;  %v690_v54 = vmul.f32 %v611_v41, %v510_v23  ;;  %v577_v16 = vld [vmem:[%s1252_s26 + $0x278] sm:$0xff]  ;;  %v527_v23 = vld [vmem:[%s1252_s26 + $0xe8] sm:$0xff] }
 0x18a   : > { %850 = vst [vmem:[%s1264_s29 + $0x210] sm:$0xff] %v744_v28  ;;  %851 = vst [vmem:[%s1264_s29 + $0x218] sm:$0xff] %v745_v32  ;;  %v691_v55 = vmul.f32 %v611_v41, %v511_v24  ;;  %v692_v56 = vmul.f32 %v616_v49, %v512_v29  ;;  %v693_v60 = vmul.f32 %v616_v49, %v513_v30  ;;  %v528_v24 = vld [vmem:[%s1252_s26 + $0xf0] sm:$0xff]  ;;  %v529_v25 = vld [vmem:[%s1252_s26 + $0xf8] sm:$0xff] }
 0x18b   : > { %852 = vst [vmem:[%s1264_s29 + $0x220] sm:$0xff] %v746_v33  ;;  %853 = vst.msk [vmem:[%s1264_s29 + $0x228] sm:$0xff] %vm789_vm5, %v747_v34  ;;  %v694_v61 = vmul.f32 %v616_v49, %v514_v31  ;;  %v695_v62 = vmul.f32 %v616_v49, %v515_v36  ;;  %v696_v63 = vmul.f32 %v616_v49, %v516_v37  ;;  %v656_v5 = vpop.permute.xlu0 %655  ;;  %v579_v30 = vld [vmem:[%s1252_s26 + $0x288] sm:$0xff]  ;;  %v580_v31 = vld [vmem:[%s1252_s26 + $0x290] sm:$0xff] }
 0x18c   : > { %844 = vst [vmem:[%s1264_s29 + $0x1e0] sm:$0xff] %v738_v35  ;;  %845 = vst [vmem:[%s1264_s29 + $0x1e8] sm:$0xff] %v739_v39  ;;  %v697_v3 = vmul.f32 %v616_v49, %v517_v38  ;;  %v698_v4 = vmul.f32 %v616_v49, %v518_v42  ;;  %v748_v9 = vmul.f32 %v656_v5, %v568_v43  ;;  %v621_v13 = vpop.permute.xlu1 %620  ;;  %v581_v32 = vld [vmem:[%s1252_s26 + $0x298] sm:$0xff]  ;;  %v530_v35 = vld [vmem:[%s1252_s26 + $0x100] sm:$0xff] }
 0x18d   : > { %846 = vst.msk [vmem:[%s1264_s29 + $0x1f0] sm:$0xff] %vm789_vm5, %v740_v40  ;;  %791 = vst [vmem:[%s1264_s29 + $0x38] sm:$0xff] %v685_v45  ;;  %v749_v10 = vmul.f32 %v656_v5, %v569_v44  ;;  %v750_v11 = vmul.f32 %v656_v5, %v570_v50  ;;  %v751_v12 = vmul.f32 %v656_v5, %v571_v51  ;;  %v531_v36 = vld [vmem:[%s1252_s26 + $0x108] sm:$0xff]  ;;  %v532_v37 = vld [vmem:[%s1252_s26 + $0x110] sm:$0xff] }
 0x18e   : > { %792 = vst [vmem:[%s1264_s29 + $0x40] sm:$0xff] %v686_v46  ;;  %793 = vst [vmem:[%s1264_s29 + $0x48] sm:$0xff] %v687_v47  ;;  %v752_v19 = vmul.f32 %v656_v5, %v572_v52  ;;  %v753_v20 = vmul.f32 %v656_v5, %v573_v57  ;;  %v754_v21 = vmul.f32 %v656_v5, %v574_v58  ;;  %v582_v44 = vld [vmem:[%s1252_s26 + $0x2a0] sm:$0xff]  ;;  %v583_v45 = vld [vmem:[%s1252_s26 + $0x2a8] sm:$0xff] }
 0x18f   : > { %794 = vst [vmem:[%s1264_s29 + $0x50] sm:$0xff] %v688_v48  ;;  %795 = vst [vmem:[%s1264_s29 + $0x58] sm:$0xff] %v689_v53  ;;  %v699_v22 = vmul.f32 %v621_v13, %v519_v59  ;;  %v700_v26 = vmul.f32 %v621_v13, %v520_v0  ;;  %v701_v27 = vmul.f32 %v621_v13, %v521_v1  ;;  %v626_v38 = vpop.permute.xlu0 %625  ;;  %v584_v46 = vld [vmem:[%s1252_s26 + $0x2b0] sm:$0xff]  ;;  %v585_v51 = vld [vmem:[%s1252_s26 + $0x2b8] sm:$0xff] }
 0x190   : > { %796 = vst [vmem:[%s1264_s29 + $0x60] sm:$0xff] %v690_v54  ;;  %797 = vst.msk [vmem:[%s1264_s29 + $0x68] sm:$0xff] %vm789_vm5, %v691_v55  ;;  %v702_v28 = vmul.f32 %v621_v13, %v522_v2  ;;  %v703_v29 = vmul.f32 %v621_v13, %v523_v6  ;;  %v704_v33 = vmul.f32 %v621_v13, %v524_v7  ;;  %v661_v39 = vpop.permute.xlu1 %660  ;;  %v586_v52 = vld [vmem:[%s1252_s26 + $0x2c0] sm:$0xff]  ;;  %v587_v53 = vld [vmem:[%s1252_s26 + $0x2c8] sm:$0xff] }
 0x191   : > { %798 = vst [vmem:[%s1264_s29 + $0x70] sm:$0xff] %v692_v56  ;;  %799 = vst [vmem:[%s1264_s29 + $0x78] sm:$0xff] %v693_v60  ;;  %v705_v34 = vmul.f32 %v621_v13, %v525_v8  ;;  %v706_v40 = vmul.f32 %v626_v38, %v526_v18  ;;  %v707_v41 = vmul.f32 %v626_v38, %v527_v23  ;;  %v588_v58 = vld [vmem:[%s1252_s26 + $0x2d0] sm:$0xff]  ;;  %v533_v59 = vld [vmem:[%s1252_s26 + $0x118] sm:$0xff] }
 0x192   : > { %800 = vst [vmem:[%s1264_s29 + $0x80] sm:$0xff] %v694_v61  ;;  %801 = vst [vmem:[%s1264_s29 + $0x88] sm:$0xff] %v695_v62  ;;  %v708_v42 = vmul.f32 %v626_v38, %v528_v24  ;;  %v709_v43 = vmul.f32 %v626_v38, %v529_v25  ;;  %v755_v47 = vmul.f32 %v661_v39, %v575_v14  ;;  %v534_v60 = vld [vmem:[%s1252_s26 + $0x120] sm:$0xff]  ;;  %v535_v0 = vld [vmem:[%s1252_s26 + $0x128] sm:$0xff] }
 0x193   : > { %802 = vst [vmem:[%s1264_s29 + $0x90] sm:$0xff] %v696_v63  ;;  %803 = vst [vmem:[%s1264_s29 + $0x98] sm:$0xff] %v697_v3  ;;  %v756_v48 = vmul.f32 %v661_v39, %v576_v15  ;;  %v757_v49 = vmul.f32 %v661_v39, %v577_v16  ;;  %v758_v50 = vmul.f32 %v661_v39, %v578_v17  ;;  %v666_v63 = vpop.permute.xlu0 %665  ;;  %v536_v1 = vld [vmem:[%s1252_s26 + $0x130] sm:$0xff]  ;;  %v537_v2 = vld [vmem:[%s1252_s26 + $0x138] sm:$0xff] }
 0x194   : > { %804 = vst.msk [vmem:[%s1264_s29 + $0xa0] sm:$0xff] %vm789_vm5, %v698_v4  ;;  %854 = vst [vmem:[%s1264_s29 + $0x230] sm:$0xff] %v748_v9  ;;  %v759_v54 = vmul.f32 %v661_v39, %v579_v30  ;;  %v760_v55 = vmul.f32 %v661_v39, %v580_v31  ;;  %v761_v56 = vmul.f32 %v661_v39, %v581_v32  ;;  %v538_v7 = vld [vmem:[%s1252_s26 + $0x140] sm:$0xff]  ;;  %v539_v8 = vld [vmem:[%s1252_s26 + $0x148] sm:$0xff]  ;;  %v631_v9 = vpop.permute.xlu1 %630 }
 0x195   : > { %855 = vst [vmem:[%s1264_s29 + $0x238] sm:$0xff] %v749_v10  ;;  %856 = vst [vmem:[%s1264_s29 + $0x240] sm:$0xff] %v750_v11  ;;  %v710_v57 = vmul.f32 %v626_v38, %v530_v35  ;;  %v711_v61 = vmul.f32 %v626_v38, %v531_v36  ;;  %v712_v62 = vmul.f32 %v626_v38, %v532_v37  ;;  %v540_v10 = vld [vmem:[%s1252_s26 + $0x150] sm:$0xff]  ;;  %v541_v15 = vld [vmem:[%s1252_s26 + $0x158] sm:$0xff] }
 0x196   : > { %857 = vst [vmem:[%s1264_s29 + $0x248] sm:$0xff] %v751_v12  ;;  %858 = vst [vmem:[%s1264_s29 + $0x250] sm:$0xff] %v752_v19  ;;  %v762_v3 = vmul.f32 %v666_v63, %v582_v44  ;;  %v763_v4 = vmul.f32 %v666_v63, %v583_v45  ;;  %v764_v5 = vmul.f32 %v666_v63, %v584_v46  ;;  %v542_v16 = vld [vmem:[%s1252_s26 + $0x160] sm:$0xff]  ;;  %v543_v17 = vld [vmem:[%s1252_s26 + $0x168] sm:$0xff] }
 0x197   : > { %859 = vst [vmem:[%s1264_s29 + $0x258] sm:$0xff] %v753_v20  ;;  %860 = vst.msk [vmem:[%s1264_s29 + $0x260] sm:$0xff] %vm789_vm5, %v754_v21  ;;  %v765_v6 = vmul.f32 %v666_v63, %v585_v51  ;;  %v766_v11 = vmul.f32 %v666_v63, %v586_v52  ;;  %v767_v12 = vmul.f32 %v666_v63, %v587_v53  ;;  %v545_v23 = vld [vmem:[%s1252_s26 + $0x178] sm:$0xff]  ;;  %v546_v24 = vld [vmem:[%s1252_s26 + $0x180] sm:$0xff] }
 0x198   : > { %805 = vst [vmem:[%s1264_s29 + $0xa8] sm:$0xff] %v699_v22  ;;  %806 = vst [vmem:[%s1264_s29 + $0xb0] sm:$0xff] %v700_v26  ;;  %v768_v13 = vmul.f32 %v666_v63, %v588_v58  ;;  %v713_v14 = vmul.f32 %v631_v9, %v533_v59  ;;  %v714_v18 = vmul.f32 %v631_v9, %v534_v60  ;;  %v544_v22 = vld [vmem:[%s1252_s26 + $0x170] sm:$0xff]  ;;  %v598_v37 = vld [vmem:[%s1252_s26 + $0x320] sm:$0xff] }
 0x199   : > { %807 = vst [vmem:[%s1264_s29 + $0xb8] sm:$0xff] %v701_v27  ;;  %808 = vst [vmem:[%s1264_s29 + $0xc0] sm:$0xff] %v702_v28  ;;  %v715_v19 = vmul.f32 %v631_v9, %v535_v0  ;;  %v716_v20 = vmul.f32 %v631_v9, %v536_v1  ;;  %v717_v21 = vmul.f32 %v631_v9, %v537_v2  ;;  %v636_v27 = vpop.permute.xlu0 %635  ;;  %v596_v32 = vld [vmem:[%s1252_s26 + $0x310] sm:$0xff]  ;;  %v599_v38 = vld [vmem:[%s1252_s26 + $0x328] sm:$0xff] }
 0x19a   : > { %809 = vst [vmem:[%s1264_s29 + $0xc8] sm:$0xff] %v703_v29  ;;  %810 = vst [vmem:[%s1264_s29 + $0xd0] sm:$0xff] %v704_v33  ;;  %v718_v25 = vmul.f32 %v631_v9, %v538_v7  ;;  %v719_v26 = vmul.f32 %v631_v9, %v539_v8  ;;  %v720_v28 = vmul.f32 %v636_v27, %v540_v10  ;;  %v597_v33 = vld [vmem:[%s1252_s26 + $0x318] sm:$0xff]  ;;  %v600_v39 = vld [vmem:[%s1252_s26 + $0x330] sm:$0xff] }
 0x19b   : > { %811 = vst.msk [vmem:[%s1264_s29 + $0xd8] sm:$0xff] %vm789_vm5, %v705_v34  ;;  %812 = vst [vmem:[%s1264_s29 + $0xe0] sm:$0xff] %v706_v40  ;;  %v721_v29 = vmul.f32 %v636_v27, %v541_v15  ;;  %v722_v30 = vmul.f32 %v636_v27, %v542_v16  ;;  %v723_v31 = vmul.f32 %v636_v27, %v543_v17  ;;  %v601_v40 = vld [vmem:[%s1252_s26 + $0x338] sm:$0xff]  ;;  %v548_v44 = vld [vmem:[%s1252_s26 + $0x190] sm:$0xff] }
 0x19c   : > { %813 = vst [vmem:[%s1264_s29 + $0xe8] sm:$0xff] %v707_v41  ;;  %814 = vst [vmem:[%s1264_s29 + $0xf0] sm:$0xff] %v708_v42  ;;  %v724_v34 = vmul.f32 %v636_v27, %v544_v22  ;;  %v725_v35 = vmul.f32 %v636_v27, %v545_v23  ;;  %v726_v36 = vmul.f32 %v636_v27, %v546_v24  ;;  %v602_v41 = vld [vmem:[%s1252_s26 + $0x340] sm:$0xff]  ;;  %v547_v42 = vld [vmem:[%s1252_s26 + $0x188] sm:$0xff] }
 0x19d   : > { %815 = vst [vmem:[%s1264_s29 + $0xf8] sm:$0xff] %v709_v43  ;;  %861 = vst [vmem:[%s1264_s29 + $0x268] sm:$0xff] %v755_v47  ;;  %v676_v43 = vpop.permute.xlu0 %675  ;;  %v549_v45 = vld [vmem:[%s1252_s26 + $0x198] sm:$0xff]  ;;  %v550_v46 = vld [vmem:[%s1252_s26 + $0x1a0] sm:$0xff] }
 0x19e   : > { %862 = vst [vmem:[%s1264_s29 + $0x270] sm:$0xff] %v756_v48  ;;  %863 = vst [vmem:[%s1264_s29 + $0x278] sm:$0xff] %v757_v49  ;;  %v776_v47 = vmul.f32 %v676_v43, %v596_v32  ;;  %v777_v48 = vmul.f32 %v676_v43, %v597_v33  ;;  %v778_v49 = vmul.f32 %v676_v43, %v598_v37  ;;  %v551_v51 = vld [vmem:[%s1252_s26 + $0x1a8] sm:$0xff]  ;;  %v552_v52 = vld [vmem:[%s1252_s26 + $0x1b0] sm:$0xff] }
 0x19f   : > { %864 = vst [vmem:[%s1264_s29 + $0x280] sm:$0xff] %v758_v50  ;;  %865 = vst [vmem:[%s1264_s29 + $0x288] sm:$0xff] %v759_v54  ;;  %v779_v50 = vmul.f32 %v676_v43, %v599_v38  ;;  %v553_v53 = vld [vmem:[%s1252_s26 + $0x1b8] sm:$0xff]  ;;  %v780_v54 = vmul.f32 %v676_v43, %v600_v39  ;;  %v590_v2 = vld [vmem:[%s1252_s26 + $0x2e0] sm:$0xff] }
 0x1a0   : > { %866 = vst [vmem:[%s1264_s29 + $0x290] sm:$0xff] %v760_v55  ;;  %867 = vst.msk [vmem:[%s1264_s29 + $0x298] sm:$0xff] %vm789_vm5, %v761_v56  ;;  %v781_v55 = vmul.f32 %v676_v43, %v601_v40  ;;  %v782_v56 = vmul.f32 %v676_v43, %v602_v41  ;;  %v595_v7 = vld [vmem:[%s1252_s26 + $0x308] sm:$0xff] }
 0x1a1   : > { %816 = vst [vmem:[%s1264_s29 + $0x100] sm:$0xff] %v710_v57  ;;  %817 = vst [vmem:[%s1264_s29 + $0x108] sm:$0xff] %v711_v61  ;;  %v641_v57 = vpop.permute.xlu1 %640 }
 0x1a2   : > { %818 = vst.msk [vmem:[%s1264_s29 + $0x110] sm:$0xff] %vm789_vm5, %v712_v62  ;;  %868 = vst [vmem:[%s1264_s29 + $0x2a0] sm:$0xff] %v762_v3  ;;  %v727_v58 = vmul.f32 %v641_v57, %v547_v42  ;;  %v728_v59 = vmul.f32 %v641_v57, %v548_v44  ;;  %v729_v60 = vmul.f32 %v641_v57, %v549_v45  ;;  %v589_v62 = vld [vmem:[%s1252_s26 + $0x2d8] sm:$0xff]  ;;  %v591_v3 = vld [vmem:[%s1252_s26 + $0x2e8] sm:$0xff] }
 0x1a3   : > { %869 = vst [vmem:[%s1264_s29 + $0x2a8] sm:$0xff] %v763_v4  ;;  %870 = vst [vmem:[%s1264_s29 + $0x2b0] sm:$0xff] %v764_v5  ;;  %v730_v61 = vmul.f32 %v641_v57, %v550_v46  ;;  %v731_v63 = vmul.f32 %v641_v57, %v551_v51  ;;  %v732_v0 = vmul.f32 %v641_v57, %v552_v52  ;;  %v592_v4 = vld [vmem:[%s1252_s26 + $0x2f0] sm:$0xff]  ;;  %v593_v5 = vld [vmem:[%s1252_s26 + $0x2f8] sm:$0xff] }
 0x1a4   : > { %871 = vst [vmem:[%s1264_s29 + $0x2b8] sm:$0xff] %v765_v6  ;;  %872 = vst [vmem:[%s1264_s29 + $0x2c0] sm:$0xff] %v766_v11  ;;  %v733_v1 = vmul.f32 %v641_v57, %v553_v53  ;;  %v594_v6 = vld [vmem:[%s1252_s26 + $0x300] sm:$0xff] }
 0x1a5   : > { %873 = vst [vmem:[%s1264_s29 + $0x2c8] sm:$0xff] %v767_v12  ;;  %874 = vst.msk [vmem:[%s1264_s29 + $0x2d0] sm:$0xff] %vm789_vm5, %v768_v13  ;;  %v671_v8 = vpop.permute.xlu1 %670 }
 0x1a6   : > { %819 = vst [vmem:[%s1264_s29 + $0x118] sm:$0xff] %v713_v14  ;;  %820 = vst [vmem:[%s1264_s29 + $0x120] sm:$0xff] %v714_v18  ;;  %v769_v9 = vmul.f32 %v671_v8, %v589_v62  ;;  %v770_v10 = vmul.f32 %v671_v8, %v590_v2  ;;  %v771_v11 = vmul.f32 %v671_v8, %v591_v3 }
 0x1a7   : > { %821 = vst [vmem:[%s1264_s29 + $0x128] sm:$0xff] %v715_v19  ;;  %822 = vst [vmem:[%s1264_s29 + $0x130] sm:$0xff] %v716_v20  ;;  %v772_v12 = vmul.f32 %v671_v8, %v592_v4  ;;  %v773_v13 = vmul.f32 %v671_v8, %v593_v5  ;;  %v774_v14 = vmul.f32 %v671_v8, %v594_v6 }
 0x1a8   : > { %823 = vst [vmem:[%s1264_s29 + $0x138] sm:$0xff] %v717_v21  ;;  %824 = vst [vmem:[%s1264_s29 + $0x140] sm:$0xff] %v718_v25  ;;  %v775_v15 = vmul.f32 %v671_v8, %v595_v7 }
 0x1a9   : > { %825 = vst.msk [vmem:[%s1264_s29 + $0x148] sm:$0xff] %vm789_vm5, %v719_v26  ;;  %826 = vst [vmem:[%s1264_s29 + $0x150] sm:$0xff] %v720_v28 }
 0x1aa   : > { %827 = vst [vmem:[%s1264_s29 + $0x158] sm:$0xff] %v721_v29  ;;  %828 = vst [vmem:[%s1264_s29 + $0x160] sm:$0xff] %v722_v30 }
 0x1ab   : > { %829 = vst [vmem:[%s1264_s29 + $0x168] sm:$0xff] %v723_v31  ;;  %830 = vst [vmem:[%s1264_s29 + $0x170] sm:$0xff] %v724_v34 }
 0x1ac   : > { %831 = vst [vmem:[%s1264_s29 + $0x178] sm:$0xff] %v725_v35  ;;  %832 = vst.msk [vmem:[%s1264_s29 + $0x180] sm:$0xff] %vm789_vm5, %v726_v36 }
 0x1ad   : > { %882 = vst [vmem:[%s1264_s29 + $0x310] sm:$0xff] %v776_v47  ;;  %883 = vst [vmem:[%s1264_s29 + $0x318] sm:$0xff] %v777_v48 }
 0x1ae   : > { %884 = vst [vmem:[%s1264_s29 + $0x320] sm:$0xff] %v778_v49  ;;  %885 = vst [vmem:[%s1264_s29 + $0x328] sm:$0xff] %v779_v50 }
 0x1af   : > { %886 = vst [vmem:[%s1264_s29 + $0x330] sm:$0xff] %v780_v54  ;;  %887 = vst [vmem:[%s1264_s29 + $0x338] sm:$0xff] %v781_v55 }
 0x1b0   : > { %888 = vst.msk [vmem:[%s1264_s29 + $0x340] sm:$0xff] %vm789_vm5, %v782_v56  ;;  %833 = vst [vmem:[%s1264_s29 + $0x188] sm:$0xff] %v727_v58 }
 0x1b1   : > { %834 = vst [vmem:[%s1264_s29 + $0x190] sm:$0xff] %v728_v59  ;;  %835 = vst [vmem:[%s1264_s29 + $0x198] sm:$0xff] %v729_v60 }
 0x1b2   : > { %836 = vst [vmem:[%s1264_s29 + $0x1a0] sm:$0xff] %v730_v61  ;;  %837 = vst [vmem:[%s1264_s29 + $0x1a8] sm:$0xff] %v731_v63 }
 0x1b3   : > { %838 = vst [vmem:[%s1264_s29 + $0x1b0] sm:$0xff] %v732_v0  ;;  %839 = vst.msk [vmem:[%s1264_s29 + $0x1b8] sm:$0xff] %vm789_vm5, %v733_v1 }
 0x1b4   : > { %875 = vst [vmem:[%s1264_s29 + $0x2d8] sm:$0xff] %v769_v9  ;;  %876 = vst [vmem:[%s1264_s29 + $0x2e0] sm:$0xff] %v770_v10 }
 0x1b5   : > { %877 = vst [vmem:[%s1264_s29 + $0x2e8] sm:$0xff] %v771_v11  ;;  %878 = vst [vmem:[%s1264_s29 + $0x2f0] sm:$0xff] %v772_v12 }
 0x1b6   : > { %879 = vst [vmem:[%s1264_s29 + $0x2f8] sm:$0xff] %v773_v13  ;;  %880 = vst [vmem:[%s1264_s29 + $0x300] sm:$0xff] %v774_v14 }
 0x1b7   : > { %881 = vst.msk [vmem:[%s1264_s29 + $0x308] sm:$0xff] %vm789_vm5, %v775_v15 }
 0x1b8 PF: > { %s13_s12 = sadd.s32 1, %s1154_s12  }
 0x1b9   : > { %p10_p4 = scmp.ge.s32.totalorder %s13_s12, 4  }
 0x1bb   :  { %12 = sbr.rel (!%p10_p4) target bundleno = 1 (0x1), region = 65 }

</bundles_post_ra>
